<compile_context>
chip_gen: v5e
topology: v5e:2x2
jax: 0.10.0
libtpu: 0.0.40
codegen_flags: <defaults>
</compile_context>

<pallas_src>
import jax
import jax.numpy as jnp
from jax.experimental import pallas as pl
from jax.experimental.pallas import tpu as pltpu

LANES = 128
SUBLANES = 8


def _round_up(x, m):
    return ((x + m - 1) // m) * m


def _pick_tile(dim_padded, candidates=(512, 256, 128)):
    """Largest candidate tile that evenly divides the (already lane-padded) dim."""
    for c in candidates:
        if dim_padded % c == 0:
            return c
    return 128


def prepare_ensemble_params(w1, b1, w2, b2):
    """One-time fusion/padding/casting of the ensemble weights (hoisted out of
    the per-call forward path).

    w1: [M, D_in, H]; b1: [M, 1, H]; w2: [M, H, D_out]; b2: [M, 1, D_out].
    """
    M, D_in, H = w1.shape
    _, _, D_out = w2.shape
    MH = M * H

    d_in_pad = _round_up(D_in, LANES)              # K of the first matmul
    mh_lane = _round_up(MH, LANES)                 # fused hidden dim
    tk = _pick_tile(mh_lane)
    mh_pad = _round_up(mh_lane, tk)
    d_out_pad = _round_up(D_out, LANES)
    tn = _pick_tile(d_out_pad)

    # W1_cat[:, m*H + h] = w1[m, :, h]   -> [D_in, M*H], zero-padded on both dims.
    w1_cat = jnp.transpose(w1, (1, 0, 2)).reshape(D_in, MH).astype(jnp.float32)
    w1_cat = jnp.pad(w1_cat, ((0, d_in_pad - D_in), (0, mh_pad - MH)))
    # b1_cat[0, m*H + h] = b1[m, 0, h]; padded columns are 0 so relu(0+0)=0
    # contributes nothing through the (zero) padded W2 rows.
    b1_cat = jnp.pad(b1.reshape(1, MH).astype(jnp.float32),
                     ((0, 0), (0, mh_pad - MH)))
    # W2_stack[m*H + h, :] = w2[m, h, :]  -> [M*H, D_out]; fold 1/M here in f32
    # BEFORE the bf16 cast so the kernel epilogue is just `acc + b2`.
    w2_stack = w2.reshape(MH, D_out).astype(jnp.float32) * (1.0 / M)
    w2_stack = jnp.pad(w2_stack, ((0, mh_pad - MH), (0, d_out_pad - D_out)))
    b2_mean = jnp.mean(b2.astype(jnp.float32), axis=0).reshape(1, D_out)
    b2_mean = jnp.pad(b2_mean, ((0, 0), (0, d_out_pad - D_out)))

    return {
        # device arrays (MXU operands in bf16, biases in f32)
        "w1": w1_cat.astype(jnp.bfloat16),
        "b1": b1_cat,
        "w2": w2_stack.astype(jnp.bfloat16),
        "b2": b2_mean,
        # static tiling metadata (Python ints)
        "d_in": D_in, "d_in_pad": d_in_pad,
        "mh_pad": mh_pad, "tk": tk,
        "d_out": D_out, "d_out_pad": d_out_pad, "tn": tn,
    }


def ensemble_forward(x, params, *, tb=None, out_dtype=None):
    """x: [B, D_in] -> [B, D_out] = mean over ensemble members."""
    B, D_in = x.shape
    assert D_in == params["d_in"], "input feature dim mismatch"
    out_dtype = x.dtype if out_dtype is None else out_dtype

    d_in_pad = params["d_in_pad"]
    mh_pad, tk = params["mh_pad"], params["tk"]
    d_out_pad, tn = params["d_out_pad"], params["tn"]

    # ---- batch tiling: >=2 tiles when possible (v7x has 2 TCs), cap at 256 ---
    b8 = _round_up(B, SUBLANES)
    if tb is None:
        if b8 >= 512:
            tb = 256
        elif b8 >= 2 * SUBLANES:
            tb = _round_up(pl.cdiv(b8, 2), SUBLANES)
        else:
            tb = b8                       # too small to split (block must be 8-aligned)
    b_pad = _round_up(b8, tb)

    # ---- pad x once (rows to tile multiple, K to lane multiple); exact zeros --
    if (b_pad != B) or (d_in_pad != D_in):
        x = jnp.pad(x, ((0, b_pad - B), (0, d_in_pad - D_in)))
    x_bf = x.astype(jnp.bfloat16)

    nb = b_pad // tb
    nn = d_out_pad // tn
    nk = mh_pad // tk

    def kernel(x_ref, w1_ref, b1_ref, w2_ref, b2_ref, o_ref, acc_ref):
        k = pl.program_id(2)

        @pl.when(k == 0)
        def _init():
            acc_ref[...] = jnp.zeros_like(acc_ref)

        # hidden chunk of all members: [tb, tk]; ReLU is columnwise so K-tiling
        # over the fused M*H dim is exact.
        h = jnp.dot(x_ref[...], w1_ref[...], preferred_element_type=jnp.float32)
        h = jnp.maximum(h + b1_ref[...], 0.0)
        # second matmul's K-reduction performs the ensemble sum (1/M pre-folded).
        acc_ref[...] += jnp.dot(h.astype(jnp.bfloat16), w2_ref[...],
                                preferred_element_type=jnp.float32)

        @pl.when(k == pl.num_programs(2) - 1)
        def _finalize():
            o_ref[...] = (acc_ref[...] + b2_ref[...]).astype(o_ref.dtype)

    # Single-buffer any block whose index_map is constant over the whole grid
    # (it is DMA'd once; double-buffering it only doubles resident VMEM).
    def _spec(shape, imap, constant):
        if constant:
            return pl.BlockSpec(shape, imap, pipeline_mode=pl.Buffered(1))
        return pl.BlockSpec(shape, imap)

    in_specs = [
        _spec((tb, d_in_pad), lambda i, j, k: (i, 0), constant=(nb == 1)),
        _spec((d_in_pad, tk), lambda i, j, k: (0, k), constant=(nk == 1)),
        _spec((1, tk),        lambda i, j, k: (0, k), constant=(nk == 1)),
        _spec((tk, tn),       lambda i, j, k: (k, j), constant=(nk == 1 and nn == 1)),
        _spec((1, tn),        lambda i, j, k: (0, j), constant=(nn == 1)),
    ]

    # ---- explicit scoped-VMEM budget (defaults: 16 MiB v5e / 32 MiB v6e,v7x) --
    out_bytes = jnp.dtype(out_dtype).itemsize
    tile_bytes = (
        2 * tb * d_in_pad * 2 +          # x tile (bf16, double-buffered)
        2 * d_in_pad * tk * 2 +          # W1 chunk
        2 * tk * 4 +                     # b1 chunk (f32)
        2 * tk * tn * 2 +                # W2 chunk
        2 * tn * 4 +                     # b2 chunk (f32)
        2 * tb * tn * out_bytes +        # output tile
        tb * tn * 4 +                    # f32 accumulator scratch
        tb * tk * 4                      # hidden intermediate
    )
    vmem_limit = int(min(max(int(tile_bytes * 1.3) + (2 << 20), 16 << 20), 64 << 20))

    out_padded = pl.pallas_call(
        kernel,
        out_shape=jax.ShapeDtypeStruct((b_pad, d_out_pad), out_dtype),
        grid_spec=pltpu.PrefetchScalarGridSpec(
            num_scalar_prefetch=0,
            grid=(nb, nn, nk),                      # reduction axis last
            in_specs=in_specs,
            out_specs=pl.BlockSpec((tb, tn), lambda i, j, k: (i, j)),
            scratch_shapes=[pltpu.VMEM((tb, tn), jnp.float32)],
        ),
        compiler_params=pltpu.CompilerParams(
            dimension_semantics=("parallel", "parallel", "arbitrary"),
            vmem_limit_bytes=vmem_limit,
        ),
    )(x_bf, params["w1"], params["b1"], params["w2"], params["b2"])

    # TODO(synk): downstream consumers that tolerate the padded [b_pad, d_out_pad]
    # bf16 slab can skip this slice and save one full-output HBM copy.
    return out_padded[:B, :params["d_out"]]


# ----------------------------- references -----------------------------------

def ensemble_forward_ref(x, w1, b1, w2, b2):
    """Pure f32 reference mirroring the PyTorch EnsembleModel semantics."""
    outs = []
    for m in range(w1.shape[0]):
        h = jnp.maximum(x @ w1[m] + b1[m], 0.0)
        outs.append(h @ w2[m] + b2[m])
    return jnp.mean(jnp.stack(outs, axis=0), axis=0)


def ensemble_forward_ref_mixed(x, w1, b1, w2, b2):
    """Same semantics with the kernel's bf16 operand rounding / 1/M fold."""
    M = w1.shape[0]
    xb = x.astype(jnp.bfloat16)
    acc = jnp.zeros((x.shape[0], w2.shape[-1]), jnp.float32)
    for m in range(M):
        h = jnp.dot(xb, w1[m].astype(jnp.bfloat16),
                    preferred_element_type=jnp.float32)
        h = jnp.maximum(h + b1[m], 0.0).astype(jnp.bfloat16)
        w2s = (w2[m].astype(jnp.float32) * (1.0 / M)).astype(jnp.bfloat16)
        acc = acc + jnp.dot(h, w2s, preferred_element_type=jnp.float32)
    return acc + jnp.mean(b2.astype(jnp.float32), axis=0)


if __name__ == "__main__":
    # Small deterministic shapes.
    M = 4        # number of ensemble members
    B = 8        # batch
    D_in = 32    # input features
    H = 32       # hidden
    D_out = 32   # output features

    key = jax.random.PRNGKey(0)
    kx, k1, k2, k3, k4 = jax.random.split(key, 5)

    x = jax.random.normal(kx, (B, D_in), dtype=jnp.float32)
    w1 = jax.random.normal(k1, (M, D_in, H), dtype=jnp.float32) * 0.1
    b1 = jax.random.normal(k2, (M, 1, H), dtype=jnp.float32) * 0.1
    w2 = jax.random.normal(k3, (M, H, D_out), dtype=jnp.float32) * 0.1
    b2 = jax.random.normal(k4, (M, 1, D_out), dtype=jnp.float32) * 0.1

    # One-time weight fusion (hoisted out of the forward path), jitted forward.
    params = prepare_ensemble_params(w1, b1, w2, b2)
    fwd = jax.jit(lambda xx: ensemble_forward(xx, params))

    out = jax.block_until_ready(fwd(x))
    assert out.shape == (B, D_out)

    # Exact-precision reference (bf16 operands, f32 accumulation) — tight tol.
    ref_mixed = ensemble_forward_ref_mixed(x, w1, b1, w2, b2)
    assert jnp.allclose(out, ref_mixed, atol=5e-4, rtol=5e-4), \
        "mismatch vs mixed-precision reference"

    # Sanity check vs the full-f32 EnsembleModel reference (bf16 rounding tol).
    ref_f32 = ensemble_forward_ref(x, w1, b1, w2, b2)
    assert jnp.allclose(out, ref_f32, atol=3e-2, rtol=3e-2), \
        "mismatch vs f32 reference"

    print("KERNEL_OK")
</pallas_src>

<mosaic_0001>
module attributes {stable_mosaic.version = 11 : i64} {
  func.func @kernel(%arg0: i32, %arg1: i32, %arg2: i32, %arg3: memref<8x128xbf16, #tpu.memory_space<vmem>>, %arg4: memref<128x128xbf16, #tpu.memory_space<vmem>>, %arg5: memref<1x128xf32, #tpu.memory_space<vmem>>, %arg6: memref<128x128xbf16, #tpu.memory_space<vmem>>, %arg7: memref<1x128xf32, #tpu.memory_space<vmem>>, %arg8: memref<8x128xf32, #tpu.memory_space<vmem>>, %arg9: memref<8x128xf32, #tpu.memory_space<vmem>>) attributes {dimension_semantics = [#tpu.dimension_semantics<parallel>, #tpu.dimension_semantics<parallel>, #tpu.dimension_semantics<arbitrary>], iteration_bounds = array<i64: 1, 1, 1>, scalar_prefetch = 0 : i64, scratch_operands = 1 : i64, tpu.core_type = #tpu.core_type<tc>, window_params = [{pipeline_mode = #tpu.pipeline_mode<synchronous>, transform_indices = @transform_0, window_bounds = array<i64: 8, 128>}, {pipeline_mode = #tpu.pipeline_mode<synchronous>, transform_indices = @transform_1, window_bounds = array<i64: 128, 128>}, {pipeline_mode = #tpu.pipeline_mode<synchronous>, transform_indices = @transform_2, window_bounds = array<i64: 1, 128>}, {pipeline_mode = #tpu.pipeline_mode<synchronous>, transform_indices = @transform_3, window_bounds = array<i64: 128, 128>}, {pipeline_mode = #tpu.pipeline_mode<synchronous>, transform_indices = @transform_4, window_bounds = array<i64: 1, 128>}, {transform_indices = @transform_5, window_bounds = array<i64: 8, 128>}]} {
    %c0_i32 = arith.constant 0 : i32
    %0 = arith.cmpi eq, %arg2, %c0_i32 : i32
    %1 = arith.extui %0 : i1 to i32
    %c0_i32_0 = arith.constant 0 : i32
    %2 = arith.cmpi ne, %1, %c0_i32_0 : i32
    scf.if %2 {
      %cst_16 = arith.constant 0.000000e+00 : f32
      %20 = vector.broadcast %cst_16 : f32 to vector<8x128xf32>
      %c0_17 = arith.constant 0 : index
      %c0_18 = arith.constant 0 : index
      %21 = vector.load %arg9[%c0_17, %c0_18] : memref<8x128xf32, #tpu.memory_space<vmem>>, vector<8x128xf32>
      tpu.vector_store %arg9[%c0_17, %c0_18], %20 {strides = array<i32>} : memref<8x128xf32, #tpu.memory_space<vmem>>, vector<8x128xf32>,
    } else {
    }
    %c0 = arith.constant 0 : index
    %c0_1 = arith.constant 0 : index
    %3 = vector.load %arg3[%c0, %c0_1] : memref<8x128xbf16, #tpu.memory_space<vmem>>, vector<8x128xbf16>
    %c0_2 = arith.constant 0 : index
    %c0_3 = arith.constant 0 : index
    %4 = vector.load %arg4[%c0_2, %c0_3] : memref<128x128xbf16, #tpu.memory_space<vmem>>, vector<128x128xbf16>
    %cst = arith.constant dense<0.000000e+00> : vector<8x128xf32>
    %5 = tpu.matmul %3, %4, %cst {dimension_numbers = #tpu.dot_dimension_numbers<[1], [0], [0], [1], [0, 0, 1, 1], [], []>} : vector<8x128xbf16>, vector<128x128xbf16>, vector<8x128xf32> -> vector<8x128xf32>
    %c0_4 = arith.constant 0 : index
    %c0_5 = arith.constant 0 : index
    %6 = vector.load %arg5[%c0_4, %c0_5] : memref<1x128xf32, #tpu.memory_space<vmem>>, vector<1x128xf32>
    %7 = vector.broadcast %6 : vector<1x128xf32> to vector<8x128xf32>
    %8 = arith.addf %5, %7 : vector<8x128xf32>
    %cst_6 = arith.constant 0.000000e+00 : f32
    %9 = vector.broadcast %cst_6 : f32 to vector<8x128xf32>
    %10 = arith.maximumf %8, %9 : vector<8x128xf32>
    %c0_7 = arith.constant 0 : index
    %c0_8 = arith.constant 0 : index
    %11 = vector.load %arg9[%c0_7, %c0_8] : memref<8x128xf32, #tpu.memory_space<vmem>>, vector<8x128xf32>
    %12 = arith.truncf %10 : vector<8x128xf32> to vector<8x128xbf16>
    %c0_9 = arith.constant 0 : index
    %c0_10 = arith.constant 0 : index
    %13 = vector.load %arg6[%c0_9, %c0_10] : memref<128x128xbf16, #tpu.memory_space<vmem>>, vector<128x128xbf16>
    %cst_11 = arith.constant dense<0.000000e+00> : vector<8x128xf32>
    %14 = tpu.matmul %12, %13, %cst_11 {dimension_numbers = #tpu.dot_dimension_numbers<[1], [0], [0], [1], [0, 0, 1, 1], [], []>} : vector<8x128xbf16>, vector<128x128xbf16>, vector<8x128xf32> -> vector<8x128xf32>
    %15 = arith.addf %11, %14 : vector<8x128xf32>
    %c0_12 = arith.constant 0 : index
    %c0_13 = arith.constant 0 : index
    %16 = vector.load %arg9[%c0_12, %c0_13] : memref<8x128xf32, #tpu.memory_space<vmem>>, vector<8x128xf32>
    tpu.vector_store %arg9[%c0_12, %c0_13], %15 {strides = array<i32>} : memref<8x128xf32, #tpu.memory_space<vmem>>, vector<8x128xf32>,
    %c0_i32_14 = arith.constant 0 : i32
    %17 = arith.cmpi eq, %arg2, %c0_i32_14 : i32
    %18 = arith.extui %17 : i1 to i32
    %c0_i32_15 = arith.constant 0 : i32
    %19 = arith.cmpi ne, %18, %c0_i32_15 : i32
    scf.if %19 {
      %c0_16 = arith.constant 0 : index
      %c0_17 = arith.constant 0 : index
      %20 = vector.load %arg9[%c0_16, %c0_17] : memref<8x128xf32, #tpu.memory_space<vmem>>, vector<8x128xf32>
      %c0_18 = arith.constant 0 : index
      %c0_19 = arith.constant 0 : index
      %21 = vector.load %arg7[%c0_18, %c0_19] : memref<1x128xf32, #tpu.memory_space<vmem>>, vector<1x128xf32>
      %22 = vector.broadcast %21 : vector<1x128xf32> to vector<8x128xf32>
      %23 = arith.addf %20, %22 : vector<8x128xf32>
      %c0_20 = arith.constant 0 : index
      %c0_21 = arith.constant 0 : index
      %24 = vector.load %arg8[%c0_20, %c0_21] : memref<8x128xf32, #tpu.memory_space<vmem>>, vector<8x128xf32>
      tpu.vector_store %arg8[%c0_20, %c0_21], %23 {strides = array<i32>} : memref<8x128xf32, #tpu.memory_space<vmem>>, vector<8x128xf32>,
    } else {
    }
    return
  }
  func.func @transform_0(%arg0: i32, %arg1: i32, %arg2: i32) -> (i32, i32) {
    %c0_i32 = arith.constant 0 : i32
    %c0_i32_0 = arith.constant 0 : i32
    return %arg0, %c0_i32 : i32, i32
  }
  func.func @transform_1(%arg0: i32, %arg1: i32, %arg2: i32) -> (i32, i32) {
    %c0_i32 = arith.constant 0 : i32
    %c0_i32_0 = arith.constant 0 : i32
    return %c0_i32, %arg2 : i32, i32
  }
  func.func @transform_2(%arg0: i32, %arg1: i32, %arg2: i32) -> (i32, i32) {
    %c0_i32 = arith.constant 0 : i32
    %c0_i32_0 = arith.constant 0 : i32
    return %c0_i32, %arg2 : i32, i32
  }
  func.func @transform_3(%arg0: i32, %arg1: i32, %arg2: i32) -> (i32, i32) {
    %c0_i32 = arith.constant 0 : i32
    return %arg2, %arg1 : i32, i32
  }
  func.func @transform_4(%arg0: i32, %arg1: i32, %arg2: i32) -> (i32, i32) {
    %c0_i32 = arith.constant 0 : i32
    %c0_i32_0 = arith.constant 0 : i32
    return %c0_i32, %arg1 : i32, i32
  }
  func.func @transform_5(%arg0: i32, %arg1: i32, %arg2: i32) -> (i32, i32) {
    %c0_i32 = arith.constant 0 : i32
    return %arg0, %arg1 : i32, i32
  }
}

</mosaic_0001>

<bundles_post_ra>
// kernel: _lambda_.1
= control target key start
LH: loop header
LB: loop body
LE: loop exit
PB: predicated region body
PF: predicated region fallthrough
CT: control target
= control target key end

     0   :  { %10 = vsyncpa [#allocation4], 0  ;;  %s468_s0 = inlined_call_operand.vmem [shape: bf16[8,128], index: 0, kind: input, shape index: {}]   ;;  %s469_s1 = inlined_call_operand.hbm [shape: bf16[128,128], index: 1, kind: input, shape index: {}]   ;;  %s470_s2 = inlined_call_operand.vmem [shape: f32[1,128], index: 2, kind: input, shape index: {}]   ;;  %s471_s3 = inlined_call_operand.hbm [shape: bf16[128,128], index: 3, kind: input, shape index: {}]   ;;  %s472_s4 = inlined_call_operand.vmem [shape: f32[1,128], index: 4, kind: input, shape index: {}]   ;;  %s473_s5 = inlined_call_operand.hbm [shape: f32[8,128], index: 5, kind: output, shape index: {}]  }
   0x1   :  { %11 = vsyncpa [#allocation7], 0 }
   0x2   :  { %12 = vsyncpa [#allocation5], 0  ;;  %s19_s20 = sshll.u32 %s469_s1, 4  ;;  %s415_s21 = smov [#allocation3]   ;;  %s20_s20 = int_to_ptr.hbm [resolvable:$true] %s19_s20 }
   0x3   :  { %s21_s22 = sshll.u32 %s415_s21, 4  ;;  %s34_s25 = sshll.u32 %s471_s3, 4  ;;  %s22_s22 = int_to_ptr.vmem [resolvable:$true] %s21_s22  ;;  %s35_s25 = int_to_ptr.hbm [resolvable:$true] %s34_s25 }
   0x4   :  { %s416_s26 = smov 64   ;;  %s417_s27 = smov 4  }
   0x5   :  { %27 = dma.hbm_to_vmem [thread:$0]  %s20_s20, 1024, %s22_s22, [#allocation4], %s416_s26, %s416_s26, %s417_s27  }
   0x6   :  { %s418_s28 = smov [#allocation6]  }
   0x7   :  { %s36_s29 = sshll.u32 %s418_s28, 4  ;;  %s37_s29 = int_to_ptr.vmem [resolvable:$true] %s36_s29 }
   0x8   :  { %42 = dma.hbm_to_vmem [thread:$0]  %s35_s25, 1024, %s37_s29, [#allocation7], %s416_s26, %s416_s26, %s417_s27  }
   0x9   :  { %409 = dma.done.wait [#allocation4], 1024  }
   0xa   :  { %410 = vsyncadd [#allocation4], 4294966272 }
   0xb   :  { %411 = dma.done.wait [#allocation7], 1024  }
   0xc   :  { %412 = vsyncadd [#allocation7], 4294966272  ;;  %v321_v0 = vld [vmem:[#allocation3 + $0x38] sm:$0xff]  ;;  %v320_v1 = vld [vmem:[#allocation3 + $0x30] sm:$0xff]  ;;  %s239_s12 = sshll.u32 %s473_s5, 4  ;;  %s240_s12 = int_to_ptr.hbm [resolvable:$true] %s239_s12 }
   0xd   :  { %127 = vmatpush.bf16.msra.mxu0 %v321_v0  ;;  %v329_v2 = vld [vmem:[#allocation6 + $0x38] sm:$0xff]  ;;  %v328_v3 = vld [vmem:[#allocation6 + $0x30] sm:$0xff]  ;;  %v319_v4 = vld [vmem:[#allocation3 + $0x28] sm:$0xff] }
   0xe   :  { %207 = vmatpush.bf16.msra.mxu1 %v329_v2  ;;  %v327_v5 = vld [vmem:[#allocation6 + $0x28] sm:$0xff]  ;;  %v318_v6 = vld [vmem:[#allocation3 + $0x20] sm:$0xff]  ;;  %v317_v8 = vld [vmem:[#allocation3 + $0x18] sm:$0xff] }
   0xf   :  { %v326_v7 = vld [vmem:[#allocation6 + $0x20] sm:$0xff]  ;;  %v325_v9 = vld [vmem:[#allocation6 + $0x18] sm:$0xff]  ;;  %v316_v10 = vld [vmem:[#allocation3 + $0x10] sm:$0xff] }
  0x10   :  { %v324_v11 = vld [vmem:[#allocation6 + $0x10] sm:$0xff]  ;;  %v315_v12 = vld [vmem:[#allocation3 + $0x8] sm:$0xff]  ;;  %v314_v13 = vld [vmem:[#allocation3] sm:$0xff] }
  0x11   :  { %128 = vmatpush.bf16.msra.mxu0 %v320_v1  ;;  %v58_v14 = vld [vmem:[%s468_s0] sm:$0xf]  ;;  %v323_v15 = vld [vmem:[#allocation6 + $0x8] sm:$0xff]  ;;  %s419_s0 = smov [#allocation8]  }
  0x12   :  { %208 = vmatpush.bf16.msra.mxu1 %v328_v3  ;;  %v322_v16 = vld [vmem:[#allocation6] sm:$0xff]  ;;  %s237_s9 = sshll.u32 %s419_s0, 4  ;;  %s238_s9 = int_to_ptr.vmem [resolvable:$true] %s237_s9 }
  0x13   :  { %v335_v17 = vld [vmem:[%s470_s2] ss:$0 sm:$0xff] }
  0x14   :  { %v336_v23 = vld [vmem:[%s472_s4] ss:$0 sm:$0xff] }
  0x15   :  { %129 = vmatpush.bf16.msra.mxu0 %v319_v4 }
  0x16   :  { %209 = vmatpush.bf16.msra.mxu1 %v327_v5 }
  0x19   :  { %130 = vmatpush.bf16.msra.mxu0 %v318_v6 }
  0x1a   :  { %210 = vmatpush.bf16.msra.mxu1 %v326_v7 }
  0x1d   :  { %131 = vmatpush.bf16.msra.mxu0 %v317_v8 }
  0x1e   :  { %211 = vmatpush.bf16.msra.mxu1 %v325_v9 }
  0x21   :  { %132 = vmatpush.bf16.msra.mxu0 %v316_v10 }
  0x22   :  { %212 = vmatpush.bf16.msra.mxu1 %v324_v11 }
  0x25   :  { %133 = vmatpush.bf16.msra.mxu0 %v315_v12 }
  0x26   :  { %213 = vmatpush.bf16.msra.mxu1 %v323_v15 }
  0x29   :  { %134 = vmatpush.bf16.msra.mxu0 %v314_v13 }
  0x2a   :  { %214 = vmatpush.bf16.msra.mxu1 %v322_v16 }
  0x2c   :  { %135 = vmatmul.bf16.vlgmr.msra.gmra.mxu0 %v58_v14 }
  0xa9   :  { %v136_v18 = vpop.f32.mrf.mxu0 }
  0xaa   :  { %v137_v19 = vadd.f32 %v335_v17, %v136_v18 }
  0xac   :  { %v140_v20 = vmax.f32 %v137_v19, 0.0 }
  0xae   :  { %v142_v21 = vpack.c.bf16 %v140_v20, %v140_v20 }
  0xb0   :  { %215 = vmatmul.bf16.vlgmr.msra.gmra.mxu1 %v142_v21 }
  0xb1   :  { %v138_v22 = vpop.f32.mrf.mxu0 }
 0x12d   :  { %v216_v24 = vpop.f32.mrf.mxu1 }
 0x12e   :  { %v230_v25 = vadd.f32 %v336_v23, %v216_v24 }
 0x130   :  { %231 = vst [vmem:[#allocation8] sm:$0xff] %v230_v25 }
 0x131   :  { %242 = dma.vmem_to_hbm [thread:$0]  %s238_s9, 128, %s240_s12, [#allocation5]  }
 0x135   :  { %v218_v26 = vpop.f32.mrf.mxu1 }
 0x136   :  { %413 = dma.done.wait [#allocation5], 128  }
 0x137   :  { %414 = vsyncadd [#allocation5], 4294967168 }
 0x138   :  { %247 = vsyncpa [#allocation4], 1 }
 0x139   :  { %248 = vsyncpa [#allocation7], 1 }
 0x13a   :  { %249 = vsyncpa [#allocation5], 1 }

</bundles_post_ra>
